<compile_context>
chip_gen: v6e
topology: v6e:2x2x1
jax: 0.10.0
libtpu: 0.0.40
codegen_flags: <defaults>
</compile_context>

<pallas_src>
import functools

import jax
import jax.numpy as jnp
from jax import lax
from jax.experimental import pallas as pl
from jax.experimental.pallas import tpu as pltpu


# ----------------------------- Pallas kernel -----------------------------

def self_attention_kernel(x_ref, xp_ref, wf_ref, wgh_ref, wo_ref, out_ref, *, nh):
    # Per-batch views (batch dim squeezed by the BlockSpec):
    #   x_ref   : (C, HW)          f32   flattened input, row-major (h, w) order
    #   xp_ref  : (C, HW)          bf16  same input, HW permuted to [k, p] pool order
    #   wf_ref  : (nh, C)          bf16
    #   wgh_ref : (nh + C//2, C)   bf16  stacked [wg; wh]
    #   wo_ref  : (C, C//2)        bf16  gamma already folded in
    #   out_ref : (C, HW)          f32
    x = x_ref[...]
    hw = x.shape[-1]
    hw4 = hw // 4

    # --- f 1x1 conv on the original (query) layout ---------------------------------
    fx = jnp.dot(wf_ref[...], x.astype(jnp.bfloat16),
                 preferred_element_type=jnp.float32)                 # (nh, HW)

    # --- g/h 1x1 convs on the pool-permuted layout, then 2x2 max-pool --------------
    # xp's HW axis is ordered [window-pos k (4), pool-cell p (HW/4)], so the pool is an
    # elementwise max over 4 contiguous HW/4 lane slices of the conv output.
    ghx = jnp.dot(wgh_ref[...], xp_ref[...],
                  preferred_element_type=jnp.float32)                # (nh + C/2, HW)
    pooled = jnp.maximum(
        jnp.maximum(ghx[:, 0 * hw4:1 * hw4], ghx[:, 1 * hw4:2 * hw4]),
        jnp.maximum(ghx[:, 2 * hw4:3 * hw4], ghx[:, 3 * hw4:4 * hw4]))  # (nh + C/2, HW4)
    gx = pooled[:nh].astype(jnp.bfloat16)                            # (nh,   HW4)
    hx = pooled[nh:].astype(jnp.bfloat16)                            # (C//2, HW4)

    # --- attention logits + key-axis softmax (torch: F.softmax(s, dim=1)) ----------
    # s = gx^T @ fx  -> (HW4, HW); softmax over axis 0 (the pooled / key axis).
    s = lax.dot_general(gx, fx.astype(jnp.bfloat16),
                        (((0,), (0,)), ((), ())),
                        preferred_element_type=jnp.float32)          # (HW4, HW)
    m = jnp.max(s, axis=0, keepdims=True)
    e = jnp.exp(s - m)                                               # f32, unnormalized
    denom = jnp.sum(e, axis=0, keepdims=True)                        # (1, HW)

    # Deferred normalization: (hx @ e) / denom  ==  hx @ softmax(s) exactly.
    ox = jnp.dot(hx, e.astype(jnp.bfloat16),
                 preferred_element_type=jnp.float32)                 # (C//2, HW)
    ox = ox * pl.reciprocal(denom, approx=True)

    out = jnp.dot(wo_ref[...], ox.astype(jnp.bfloat16),
                  preferred_element_type=jnp.float32)                # (C, HW)
    out_ref[...] = out + x                                           # gamma folded into wo


# ----------------------------- Wrapper / glue -----------------------------

@jax.jit
def self_attention_forward(x, wf, wg, wh, wo, gamma):
    B, C, H, W = x.shape
    HW = H * W
    nh = wf.shape[0]
    nfh = wh.shape[0]                 # nf // 2

    x_flat = x.reshape(B, C, HW)                                     # free reshape

    # Permute the spatial axis into [window-pos k = 2*dy+dx, pool-cell p] order.
    # Commutes with the 1x1 convs, so the in-kernel pool is a max over 4 lane slices.
    x_perm = (x.reshape(B, C, H // 2, 2, W // 2, 2)
                .transpose(0, 1, 3, 5, 2, 4)
                .reshape(B, C, HW)
                .astype(jnp.bfloat16))                               # ~C*HW*2 B per batch

    wf_b = wf.astype(jnp.bfloat16)                                   # (nh, C)
    wgh = jnp.concatenate([wg, wh], axis=0).astype(jnp.bfloat16)     # (nh + nf/2, C)
    wo_b = (gamma[0] * wo).astype(jnp.bfloat16)                      # gamma folded in

    kernel = functools.partial(self_attention_kernel, nh=nh)
    out = pl.pallas_call(
        kernel,
        out_shape=jax.ShapeDtypeStruct((B, C, HW), jnp.float32),
        grid_spec=pltpu.PrefetchScalarGridSpec(
            num_scalar_prefetch=0,
            grid=(B,),
            in_specs=[
                pl.BlockSpec((None, C, HW), lambda b: (b, 0, 0)),    # x_flat   f32
                pl.BlockSpec((None, C, HW), lambda b: (b, 0, 0)),    # x_perm   bf16
                pl.BlockSpec((nh, C), lambda b: (0, 0)),             # wf       bf16
                pl.BlockSpec((nh + nfh, C), lambda b: (0, 0)),       # [wg; wh] bf16
                pl.BlockSpec((C, nfh), lambda b: (0, 0)),            # gamma*wo bf16
            ],
            out_specs=pl.BlockSpec((None, C, HW), lambda b: (b, 0, 0)),
        ),
        compiler_params=pltpu.CompilerParams(
            dimension_semantics=("parallel",)),
        # TODO(synk): at large H*W, add a query-tile grid axis over HW (softmax is over
        # keys, so no online-softmax rework) and size tiles for v7x's 64 MiB VMEM
        # (<=~32 MiB working set incl. double-buffers); raise vmem_limit_bytes on v5e/v6e.
    )(x_flat, x_perm, wf_b, wgh, wo_b)
    return out.reshape(B, C, H, W)


# ----------------------------- Param setup -----------------------------

def _spectral_norm(w, key, n_iter=1, eps=1e-12):
    """One power-iteration spectral normalization (torch spectral_norm style).
    w: (out, in) weight of a 1x1 conv."""
    w_mat = w.reshape(w.shape[0], -1)
    u = jax.random.normal(key, (w.shape[0],), dtype=w.dtype)
    u = u / (jnp.linalg.norm(u) + eps)
    v = None
    for _ in range(n_iter):
        v = w_mat.T @ u
        v = v / (jnp.linalg.norm(v) + eps)
        u = w_mat @ v
        u = u / (jnp.linalg.norm(u) + eps)
    sigma = u @ (w_mat @ v)
    return w / sigma


def make_params(nf, nh, key):
    k0, k1, k2, k3, k4, k5, k6, k7 = jax.random.split(key, 8)
    wf = 0.1 * jax.random.normal(k0, (nh, nf), dtype=jnp.float32)
    wg = 0.1 * jax.random.normal(k1, (nh, nf), dtype=jnp.float32)
    wh = 0.1 * jax.random.normal(k2, (nf // 2, nf), dtype=jnp.float32)
    wo = 0.1 * jax.random.normal(k3, (nf, nf // 2), dtype=jnp.float32)
    wf = _spectral_norm(wf, k4)
    wg = _spectral_norm(wg, k5)
    wh = _spectral_norm(wh, k6)
    wo = _spectral_norm(wo, k7)
    gamma = jnp.array([0.5], dtype=jnp.float32)   # torch init: zeros(1)
    return wf, wg, wh, wo, gamma


# ----------------------------- Pure-JAX reference -----------------------------
# Mirrors the kernel's mixed-precision policy (bf16 matmul operands, f32 accumulation)
# so the allclose check isolates structural errors; the remaining difference is the
# deferred-normalization / approx-reciprocal path (well below 1e-2).

def reference_forward(x, wf, wg, wh, wo, gamma):
    B, C, H, W = x.shape
    HW = H * W
    xf = x.reshape(B, C, HW)
    xb = xf.astype(jnp.bfloat16)
    f16 = lambda a: a.astype(jnp.bfloat16)

    fx = jnp.einsum('oc,bcn->bon', f16(wf), xb, preferred_element_type=jnp.float32)

    def conv_pool(wt):
        y = jnp.einsum('oc,bcn->bon', f16(wt), xb, preferred_element_type=jnp.float32)
        y = y.reshape(B, wt.shape[0], H // 2, 2, W // 2, 2).max(axis=(3, 5))
        return y.reshape(B, wt.shape[0], HW // 4)

    gx = conv_pool(wg)
    hx = conv_pool(wh)
    s = jnp.einsum('bnk,bnq->bkq', f16(gx), f16(fx),
                   preferred_element_type=jnp.float32)          # (B, HW4, HW)
    p = jax.nn.softmax(s, axis=1)                               # torch: F.softmax(dim=1)
    ox = jnp.einsum('bck,bkq->bcq', f16(hx), f16(p),
                    preferred_element_type=jnp.float32)
    out = jnp.einsum('oc,bcq->boq', f16(wo), f16(ox),
                     preferred_element_type=jnp.float32)
    return (out * gamma[0] + xf).reshape(B, C, H, W)


# ----------------------------- Main -----------------------------

if __name__ == "__main__":
    B, nf, H, W = 2, 16, 16, 16
    nh = 8                                   # module default would be max(nf // 8, 1) = 2

    key = jax.random.PRNGKey(0)
    kx, kp = jax.random.split(key)
    x = jax.random.normal(kx, (B, nf, H, W), dtype=jnp.float32)
    wf, wg, wh, wo, gamma = make_params(nf, nh, kp)

    y = self_attention_forward(x, wf, wg, wh, wo, gamma)
    y = jax.block_until_ready(y)

    y_ref = reference_forward(x, wf, wg, wh, wo, gamma)
    if not jnp.allclose(y, y_ref, rtol=2e-2, atol=2e-2):
        raise AssertionError("Pallas kernel output does not match reference")

    print("KERNEL_OK")
</pallas_src>

<mosaic_0001>
module attributes {stable_mosaic.version = 11 : i64} {
  func.func @self_attention_kernel(%arg0: i32, %arg1: memref<1x16x256xf32, #tpu.memory_space<vmem>>, %arg2: memref<1x16x256xbf16, #tpu.memory_space<vmem>>, %arg3: memref<8x16xbf16, #tpu.memory_space<vmem>>, %arg4: memref<16x16xbf16, #tpu.memory_space<vmem>>, %arg5: memref<16x8xbf16, #tpu.memory_space<vmem>>, %arg6: memref<1x16x256xf32, #tpu.memory_space<vmem>>) attributes {dimension_semantics = [#tpu.dimension_semantics<parallel>], iteration_bounds = array<i64: 2>, scalar_prefetch = 0 : i64, scratch_operands = 0 : i64, tpu.core_type = #tpu.core_type<tc>, window_params = [{transform_indices = @transform_0, window_bounds = array<i64: 1, 16, 256>}, {transform_indices = @transform_1, window_bounds = array<i64: 1, 16, 256>}, {pipeline_mode = #tpu.pipeline_mode<synchronous>, transform_indices = @transform_2, window_bounds = array<i64: 8, 16>}, {pipeline_mode = #tpu.pipeline_mode<synchronous>, transform_indices = @transform_3, window_bounds = array<i64: 16, 16>}, {pipeline_mode = #tpu.pipeline_mode<synchronous>, transform_indices = @transform_4, window_bounds = array<i64: 16, 8>}, {transform_indices = @transform_5, window_bounds = array<i64: 1, 16, 256>}]} {
    %c0 = arith.constant 0 : index
    %c0_0 = arith.constant 0 : index
    %c0_1 = arith.constant 0 : index
    %0 = vector.load %arg1[%c0, %c0_0, %c0_1] : memref<1x16x256xf32, #tpu.memory_space<vmem>>, vector<1x16x256xf32>
    %1 = vector.shape_cast %0 : vector<1x16x256xf32> to vector<16x256xf32>
    %c0_2 = arith.constant 0 : index
    %c0_3 = arith.constant 0 : index
    %2 = vector.load %arg3[%c0_2, %c0_3] : memref<8x16xbf16, #tpu.memory_space<vmem>>, vector<8x16xbf16>
    %3 = arith.truncf %1 : vector<16x256xf32> to vector<16x256xbf16>
    %cst = arith.constant dense<0.000000e+00> : vector<8x256xf32>
    %4 = tpu.matmul %2, %3, %cst {dimension_numbers = #tpu.dot_dimension_numbers<[1], [0], [0], [1], [0, 0, 1, 1], [], []>} : vector<8x16xbf16>, vector<16x256xbf16>, vector<8x256xf32> -> vector<8x256xf32>
    %c0_4 = arith.constant 0 : index
    %c0_5 = arith.constant 0 : index
    %5 = vector.load %arg4[%c0_4, %c0_5] : memref<16x16xbf16, #tpu.memory_space<vmem>>, vector<16x16xbf16>
    %c0_6 = arith.constant 0 : index
    %c0_7 = arith.constant 0 : index
    %c0_8 = arith.constant 0 : index
    %6 = vector.load %arg2[%c0_6, %c0_7, %c0_8] : memref<1x16x256xbf16, #tpu.memory_space<vmem>>, vector<1x16x256xbf16>
    %7 = vector.shape_cast %6 : vector<1x16x256xbf16> to vector<16x256xbf16>
    %cst_9 = arith.constant dense<0.000000e+00> : vector<16x256xf32>
    %8 = tpu.matmul %5, %7, %cst_9 {dimension_numbers = #tpu.dot_dimension_numbers<[1], [0], [0], [1], [0, 0, 1, 1], [], []>} : vector<16x16xbf16>, vector<16x256xbf16>, vector<16x256xf32> -> vector<16x256xf32>
    %9 = vector.extract_strided_slice %8 {offsets = [0, 0], sizes = [16, 64], strides = [1, 1]} : vector<16x256xf32> to vector<16x64xf32>
    %10 = vector.extract_strided_slice %8 {offsets = [0, 64], sizes = [16, 64], strides = [1, 1]} : vector<16x256xf32> to vector<16x64xf32>
    %11 = arith.maximumf %9, %10 : vector<16x64xf32>
    %12 = vector.extract_strided_slice %8 {offsets = [0, 128], sizes = [16, 64], strides = [1, 1]} : vector<16x256xf32> to vector<16x64xf32>
    %13 = vector.extract_strided_slice %8 {offsets = [0, 192], sizes = [16, 64], strides = [1, 1]} : vector<16x256xf32> to vector<16x64xf32>
    %14 = arith.maximumf %12, %13 : vector<16x64xf32>
    %15 = arith.maximumf %11, %14 : vector<16x64xf32>
    %16 = vector.extract_strided_slice %15 {offsets = [0, 0], sizes = [8, 64], strides = [1, 1]} : vector<16x64xf32> to vector<8x64xf32>
    %17 = arith.truncf %16 : vector<8x64xf32> to vector<8x64xbf16>
    %18 = vector.extract_strided_slice %15 {offsets = [8, 0], sizes = [8, 64], strides = [1, 1]} : vector<16x64xf32> to vector<8x64xf32>
    %19 = arith.truncf %18 : vector<8x64xf32> to vector<8x64xbf16>
    %20 = arith.truncf %4 : vector<8x256xf32> to vector<8x256xbf16>
    %cst_10 = arith.constant dense<0.000000e+00> : vector<64x256xf32>
    %21 = tpu.matmul %17, %20, %cst_10 {dimension_numbers = #tpu.dot_dimension_numbers<[0], [0], [1], [1], [0, 1, 1, 1], [], []>} : vector<8x64xbf16>, vector<8x256xbf16>, vector<64x256xf32> -> vector<64x256xf32>
    %cst_11 = arith.constant dense<0xFF800000> : vector<256xf32>
    %22 = vector.multi_reduction <maximumf>, %21, %cst_11 [0] : vector<64x256xf32> to vector<256xf32>
    %23 = vector.shape_cast %22 : vector<256xf32> to vector<1x256xf32>
    %24 = vector.broadcast %23 : vector<1x256xf32> to vector<64x256xf32>
    %25 = arith.subf %21, %24 : vector<64x256xf32>
    %26 = math.exp %25 : vector<64x256xf32>
    %cst_12 = arith.constant dense<0.000000e+00> : vector<256xf32>
    %27 = vector.multi_reduction <add>, %26, %cst_12 [0] : vector<64x256xf32> to vector<256xf32>
    %28 = vector.shape_cast %27 : vector<256xf32> to vector<1x256xf32>
    %29 = arith.truncf %26 : vector<64x256xf32> to vector<64x256xbf16>
    %cst_13 = arith.constant dense<0.000000e+00> : vector<8x256xf32>
    %30 = tpu.matmul %19, %29, %cst_13 {dimension_numbers = #tpu.dot_dimension_numbers<[1], [0], [0], [1], [0, 0, 1, 1], [], []>} : vector<8x64xbf16>, vector<64x256xbf16>, vector<8x256xf32> -> vector<8x256xf32>
    %31 = tpu.reciprocal %28 {approx = true} : vector<1x256xf32> -> vector<1x256xf32>
    %32 = vector.broadcast %31 : vector<1x256xf32> to vector<8x256xf32>
    %33 = arith.mulf %30, %32 : vector<8x256xf32>
    %c0_14 = arith.constant 0 : index
    %c0_15 = arith.constant 0 : index
    %34 = vector.load %arg5[%c0_14, %c0_15] : memref<16x8xbf16, #tpu.memory_space<vmem>>, vector<16x8xbf16>
    %35 = arith.truncf %33 : vector<8x256xf32> to vector<8x256xbf16>
    %cst_16 = arith.constant dense<0.000000e+00> : vector<16x256xf32>
    %36 = tpu.matmul %34, %35, %cst_16 {dimension_numbers = #tpu.dot_dimension_numbers<[1], [0], [0], [1], [0, 0, 1, 1], [], []>} : vector<16x8xbf16>, vector<8x256xbf16>, vector<16x256xf32> -> vector<16x256xf32>
    %37 = arith.addf %36, %1 : vector<16x256xf32>
    %c0_17 = arith.constant 0 : index
    %c0_18 = arith.constant 0 : index
    %c0_19 = arith.constant 0 : index
    %38 = vector.load %arg6[%c0_17, %c0_18, %c0_19] : memref<1x16x256xf32, #tpu.memory_space<vmem>>, vector<1x16x256xf32>
    %39 = vector.shape_cast %38 : vector<1x16x256xf32> to vector<16x256xf32>
    %40 = vector.shape_cast %37 : vector<16x256xf32> to vector<1x16x256xf32>
    tpu.vector_store %arg6[%c0_17, %c0_18, %c0_19], %40 {strides = array<i32>} : memref<1x16x256xf32, #tpu.memory_space<vmem>>, vector<1x16x256xf32>,
    return
  }
  func.func @transform_0(%arg0: i32) -> (i32, i32, i32) {
    %c0_i32 = arith.constant 0 : i32
    %c0_i32_0 = arith.constant 0 : i32
    %c0_i32_1 = arith.constant 0 : i32
    return %arg0, %c0_i32, %c0_i32_0 : i32, i32, i32
  }
  func.func @transform_1(%arg0: i32) -> (i32, i32, i32) {
    %c0_i32 = arith.constant 0 : i32
    %c0_i32_0 = arith.constant 0 : i32
    %c0_i32_1 = arith.constant 0 : i32
    return %arg0, %c0_i32, %c0_i32_0 : i32, i32, i32
  }
  func.func @transform_2(%arg0: i32) -> (i32, i32) {
    %c0_i32 = arith.constant 0 : i32
    %c0_i32_0 = arith.constant 0 : i32
    %c0_i32_1 = arith.constant 0 : i32
    return %c0_i32, %c0_i32_0 : i32, i32
  }
  func.func @transform_3(%arg0: i32) -> (i32, i32) {
    %c0_i32 = arith.constant 0 : i32
    %c0_i32_0 = arith.constant 0 : i32
    %c0_i32_1 = arith.constant 0 : i32
    return %c0_i32, %c0_i32_0 : i32, i32
  }
  func.func @transform_4(%arg0: i32) -> (i32, i32) {
    %c0_i32 = arith.constant 0 : i32
    %c0_i32_0 = arith.constant 0 : i32
    %c0_i32_1 = arith.constant 0 : i32
    return %c0_i32, %c0_i32_0 : i32, i32
  }
  func.func @transform_5(%arg0: i32) -> (i32, i32, i32) {
    %c0_i32 = arith.constant 0 : i32
    %c0_i32_0 = arith.constant 0 : i32
    %c0_i32_1 = arith.constant 0 : i32
    return %arg0, %c0_i32, %c0_i32_0 : i32, i32, i32
  }
}

</mosaic_0001>

<bundles_post_ra>
// kernel: self_attention_forward.1
= control target key start
LH: loop header
LB: loop body
LE: loop exit
PB: predicated region body
PF: predicated region fallthrough
CT: control target
= control target key end

     0   :  { %s918_s18 = smov 0   ;;  %s1024_s0 = inlined_call_operand.vmem [shape: f32[2,16,256], index: 0, kind: input, shape index: {}]   ;;  %s1025_s1 = inlined_call_operand.vmem [shape: bf16[2,16,256], index: 1, kind: input, shape index: {}]   ;;  %s1026_s2 = inlined_call_operand.vmem [shape: bf16[8,16], index: 2, kind: input, shape index: {}]   ;;  %s1027_s3 = inlined_call_operand.vmem [shape: bf16[16,16], index: 3, kind: input, shape index: {}]   ;;  %s1028_s4 = inlined_call_operand.vmem [shape: bf16[16,8], index: 4, kind: input, shape index: {}]   ;;  %s1029_s5 = inlined_call_operand.vmem [shape: f32[2,16,256], index: 5, kind: output, shape index: {}]  }
   0x1 LB: > { %s787_s19 = sadd.s32 4294967295, %s884_s18   ;;  %p791_p0 = scmp.ge.s32.totalorder %s884_s18, 1  ;;  %s884_s18 = sphi %s918_s18, %s15_s18  }
   0x2   : > { %p197_p1 = scmp.lt.s32.totalorder %s884_s18, 3 }
   0x4   : > { %p198_p2 = pnand %p791_p0, %p197_p1 }
   0x5   : > { %p230_p3 = scmp.lt.s32.totalorder (!%p198_p2), %s787_s19, 1  ;;  %s887_s7 = smov (!%p198_p2), 64  }
   0x6   : > { %201 = sbr.rel (%p198_p2) target bundleno = 1131 (0x46b), region = 40 }
   0xb   : > { %v886_v0 = vmov 0   ;;  %s1031_s19 = smov (!%p230_p3, %s787_s19), 1  ;;  %v840_v3 = vld [vmem:[%s1027_s3] sm:$0xff]   ;;  %vm253_vm0 = vcmask 130048   ;;  %vm418_vm1 = vcmask 1043456   ;;  %vm405_vm2 = vcmask 64512  }
   0xc   : > { %352 = vmatprep.mubr.bf16.mxu1 %v886_v0  ;;  %289 = vmatprep.mubr.bf16.mxu0 %v886_v0  ;;  %s815_s20 = sshll.u32 %s1031_s19, 4  ;;  %s814_s26 = sshll.u32 %s1031_s19, 5  ;;  %v250_v10 = vld [vmem:[%s1026_s2] sm:$0xf]  ;;  %vm606_vm3 = vcmask 523264  }
   0xd   : > { %s239_s23 = scalar_lea.vmem %s1025_s1, %s815_s20  ;;  %s234_s29 = scalar_lea.vmem %s1024_s0, %s814_s26 }
   0xe   : > { %v837_v1 = vld [vmem:[%s239_s23 + $0x4] ss:$8 sps:$4 sm:$0xff]   ;;  %v839_v2 = vld [vmem:[%s239_s23] ss:$8 sps:$4 sm:$0xff]   ;;  %v946_v5 = vld [vmem:[%s234_s29 + $0x18] sm:$0xff]  ;;  %s244_s12 = scalar_lea.vmem %s1029_s5, %s814_s26 }
   0xf   : > { %334 = vmatprep.subr.bf16.mxu1 %v837_v1  ;;  %v944_v4 = vld [vmem:[%s234_s29 + $0x8] sm:$0xff]  ;;  %v948_v6 = vld [vmem:[%s234_s29] sm:$0xff]  ;;  %v952_v8 = vld [vmem:[%s234_s29 + $0x10] sm:$0xff] }
  0x10   : > { %335 = vmatpush1.bf16.msra.mxu1 %v839_v2  ;;  %v252_v7 = vpack.c.bf16 %v946_v5, %v944_v4  ;;  %v251_v9 = vpack.c.bf16 %v952_v8, %v948_v6 }
  0x12   : > { %271 = vmatprep.subr.bf16.mxu0 %v252_v7 }
  0x13   : > { %802 = vmatmul.mubr.msk.bf16.vlgmr.msra.gmra.mxu1 %vm253_vm0, %v840_v3  ;;  %272 = vmatpush1.bf16.msra.mxu0 %v251_v9 }
  0x14   : > { %642 = vmatprep.mubr.bf16.mxu1 %v886_v0 }
  0x16   : > { %798 = vmatmul.mubr.msk.bf16.vlgmr.msra.gmra.mxu0 %vm253_vm0, %v250_v10 }
  0x17   : > { %457 = vmatprep.mubr.bf16.mxu0 %v886_v0 }
  0xd3   : > { %v354_v11 = vpop.f32.mrf.mxu1 }
  0xd5   : > { %v356_v12 = vpop.f32.mrf.mxu1 }
  0xd6   : > { %v827_v13 = vpack.i.bf16 %v356_v12, %v354_v11  ;;  %v291_v17 = vpop.f32.mrf.mxu0 }
  0xd7   : > { %v960_v14 = vpop.f32.mrf.mxu1  ;;  %v387_v18 = vpack.c.bf16 %v291_v17, %v291_v17 }
  0xd8   : > { %828 = vrot.lane.b32.xlu0 %v827_v13, %s887_s7  ;;  %v293_v19 = vpop.f32.mrf.mxu0 }
  0xd9   : > { %v962_v15 = vpop.f32.mrf.mxu1  ;;  %v420_v20 = vsel %vm418_vm1, %v387_v18, 0  ;;  %v388_v21 = vpack.c.bf16 %v293_v19, %v293_v19 }
  0xda   : > { %v832_v16 = vpack.i.bf16 %v962_v15, %v960_v14  ;;  %v295_v22 = vpop.f32.mrf.mxu0 }
  0xdb   : > { %803 = vmatprep.subr.msk.bf16.mxu0 %vm418_vm1, %v388_v21 }
  0xdc   : > { %833 = vrot.lane.b32.xlu1 %v832_v16, %s887_s7  ;;  %v296_v23 = vpop.f32.mrf.mxu0  ;;  %440 = vmatpush1.bf16.msra.mxu0 %v420_v20 }
 0x14a   : > { %v829_v24 = vpop.permute.xlu0 %828 }
 0x14b   : > { %v831_v25 = vunpack.i.h.bf16 %v829_v24  ;;  %v830_v26 = vunpack.i.l.bf16 %v829_v24 }
 0x14d   : > { %v381_v27 = vmax.f32 %v356_v12, %v831_v25  ;;  %v371_v28 = vmax.f32 %v354_v11, %v830_v26 }
 0x14f   : > { %v383_v29 = vmax.f32 %v371_v28, %v381_v27 }
 0x151   : > { %v385_v30 = vpack.c.bf16 %v383_v29, %v383_v29 }
 0x153   : > { %389 = vxpose.xlu0.c.b16.start.end [1/1] (short) (narrow) %v385_v30, 64 }
 0x1b5   : > { %v397_v31 = vpop.trf.xlu0 }
 0x1b6   : > { %804 = vmatmul.mubr.msk.bf16.vlgmr.msra.gmra.mxu0 %vm405_vm2, %v397_v31 }
 0x1b7   : > { %467 = vmatprep.mubr.bf16.mxu0 %v886_v0 }
 0x1b9   : > { %v398_v32 = vpop.trf.xlu0 }
 0x1bd   : > { %v399_v33 = vpop.trf.xlu0 }
 0x1be   : > { %805 = vmatmul.mubr.msk.bf16.gmra.mxu0 %vm405_vm2, %v398_v32 }
 0x1bf   : > { %477 = vmatprep.mubr.bf16.mxu0 %v886_v0 }
 0x1c1   : > { %v400_v34 = vpop.trf.xlu0 }
 0x1c6   : > { %806 = vmatmul.mubr.msk.bf16.gmra.mxu0 %vm405_vm2, %v399_v33 }
 0x1c7   : > { %487 = vmatprep.mubr.bf16.mxu0 %v886_v0 }
 0x1ce   : > { %807 = vmatmul.mubr.msk.bf16.gmra.mxu0 %vm405_vm2, %v400_v34 }
 0x276   : > { %v459_v35 = vpop.f32.mrf.mxu0 }
 0x278   : > { %v975_v36 = vpop.f32.mrf.mxu0 }
 0x27a   : > { %v463_v37 = vpop.f32.mrf.mxu0 }
 0x27c   : > { %v977_v38 = vpop.f32.mrf.mxu0 }
 0x27e   : > { %v469_v39 = vpop.f32.mrf.mxu0 }
 0x27f   : > { %v498_v48 = vmax.f32 %v459_v35, %v469_v39 }
 0x280   : > { %v979_v40 = vpop.f32.mrf.mxu0 }
 0x281   : > { %v511_v51 = vmax.f32 %v975_v36, %v979_v40 }
 0x282   : > { %v473_v41 = vpop.f32.mrf.mxu0 }
 0x283   : > { %v499_v49 = vmax.f32 %v463_v37, %v473_v41 }
 0x284   : > { %v981_v42 = vpop.f32.mrf.mxu0 }
 0x285   : > { %v512_v52 = vmax.f32 %v977_v38, %v981_v42 }
 0x286   : > { %v479_v43 = vpop.f32.mrf.mxu0 }
 0x287   : > { %v500_v53 = vmax.f32 %v498_v48, %v479_v43 }
 0x288   : > { %v983_v44 = vpop.f32.mrf.mxu0 }
 0x289   : > { %v513_v56 = vmax.f32 %v511_v51, %v983_v44 }
 0x28a   : > { %v483_v45 = vpop.f32.mrf.mxu0 }
 0x28b   : > { %v501_v54 = vmax.f32 %v499_v49, %v483_v45 }
 0x28c   : > { %v985_v46 = vpop.f32.mrf.mxu0 }
 0x28d   : > { %v514_v57 = vmax.f32 %v512_v52, %v985_v46 }
 0x28e   : > { %v489_v47 = vpop.f32.mrf.mxu0 }
 0x28f   : > { %v502_v58 = vmax.f32 %v500_v53, %v489_v47 }
 0x290   : > { %v987_v50 = vpop.f32.mrf.mxu0 }
 0x291   : > { %v515_v61 = vmax.f32 %v513_v56, %v987_v50 }
 0x292   : > { %v493_v55 = vpop.f32.mrf.mxu0 }
 0x293   : > { %v503_v59 = vmax.f32 %v501_v54, %v493_v55 }
 0x294   : > { %v495_v60 = vpop.f32.mrf.mxu0 }
 0x295   : > { %v504_v62 = vmax.f32 %v502_v58, %v503_v59  ;;  %v516_v63 = vmax.f32 %v514_v57, %v495_v60 }
 0x297   : > { %v505_v1 = vrot.slane %v504_v62, 4  ;;  %v517_v2 = vmax.f32 %v515_v61, %v516_v63 }
 0x299   : > { %v506_v3 = vmax.f32 %v504_v62, %v505_v1  ;;  %v518_v7 = vrot.slane %v517_v2, 4 }
 0x29b   : > { %v507_v9 = vrot.slane %v506_v3, 2  ;;  %v519_v10 = vmax.f32 %v517_v2, %v518_v7 }
 0x29d   : > { %v508_v11 = vmax.f32 %v506_v3, %v507_v9  ;;  %v520_v12 = vrot.slane %v519_v10, 2 }
 0x29f   : > { %v509_v13 = vrot.slane %v508_v11, 1  ;;  %v521_v16 = vmax.f32 %v519_v10, %v520_v12 }
 0x2a1   : > { %v510_v17 = vmax.f32 %v508_v11, %v509_v13  ;;  %v522_v18 = vrot.slane %v521_v16, 1 }
 0x2a3   : > { %v524_v19 = vsub.f32 %v459_v35, %v510_v17  ;;  %v526_v20 = vsub.f32 %v463_v37, %v510_v17  ;;  %v528_v21 = vsub.f32 %v469_v39, %v510_v17  ;;  %v530_v22 = vsub.f32 %v473_v41, %v510_v17 }
 0x2a4   : > { %v532_v23 = vsub.f32 %v479_v43, %v510_v17  ;;  %v534_v24 = vsub.f32 %v483_v45, %v510_v17  ;;  %v536_v25 = vsub.f32 %v489_v47, %v510_v17  ;;  %v523_v29 = vmax.f32 %v521_v16, %v522_v18 }
 0x2a5   : > { %v540_v26 = vmul.f32 1.442695, %v524_v19  ;;  %v544_v27 = vmul.f32 1.442695, %v526_v20  ;;  %v548_v28 = vmul.f32 1.442695, %v528_v21  ;;  %v538_v30 = vsub.f32 %v493_v55, %v510_v17 }
 0x2a6   : > { %v552_v31 = vmul.f32 1.442695, %v530_v22  ;;  %v556_v32 = vmul.f32 1.442695, %v532_v23  ;;  %v525_v33 = vsub.f32 %v975_v36, %v523_v29  ;;  %v560_v34 = vmul.f32 1.442695, %v534_v24  ;;  %v834_v23 = vpop.permute.xlu1 %833 }
 0x2a7   : > { %842 = vpow2.f32 %v540_v26  ;;  %v527_v35 = vsub.f32 %v977_v38, %v523_v29  ;;  %v564_v37 = vmul.f32 1.442695, %v536_v25  ;;  %v529_v39 = vsub.f32 %v979_v40, %v523_v29 }
 0x2a8   : > { %844 = vpow2.f32 %v544_v27  ;;  %v568_v41 = vmul.f32 1.442695, %v538_v30  ;;  %v531_v43 = vsub.f32 %v981_v42, %v523_v29  ;;  %v533_v45 = vsub.f32 %v983_v44, %v523_v29 }
 0x2a9   : > { %846 = vpow2.f32 %v548_v28  ;;  %v542_v47 = vmul.f32 1.442695, %v525_v33  ;;  %v535_v48 = vsub.f32 %v985_v46, %v523_v29  ;;  %v546_v36 = vmul.f32 1.442695, %v527_v35 }
 0x2aa   : > { %848 = vpow2.f32 %v552_v31  ;;  %v537_v49 = vsub.f32 %v987_v50, %v523_v29  ;;  %v550_v38 = vmul.f32 1.442695, %v529_v39  ;;  %v539_v51 = vsub.f32 %v495_v60, %v523_v29 }
 0x2ab   : > { %850 = vpow2.f32 %v556_v32  ;;  %v554_v52 = vmul.f32 1.442695, %v531_v43  ;;  %v558_v40 = vmul.f32 1.442695, %v533_v45  ;;  %v562_v53 = vmul.f32 1.442695, %v535_v48 }
 0x2ac   : > { %852 = vpow2.f32 %v560_v34  ;;  %v566_v42 = vmul.f32 1.442695, %v537_v49  ;;  %v570_v44 = vmul.f32 1.442695, %v539_v51  ;;  %v836_v27 = vunpack.i.h.bf16 %v834_v23 }
 0x2ad   : > { %854 = vpow2.f32 %v564_v37  ;;  %v835_v28 = vunpack.i.l.bf16 %v834_v23 }
 0x2ae   : > { %856 = vpow2.f32 %v568_v41  ;;  %v382_v33 = vmax.f32 %v962_v15, %v836_v27 }
 0x2af   : > { %858 = vpow2.f32 %v542_v47  ;;  %v372_v34 = vmax.f32 %v960_v14, %v835_v28 }
 0x2b0   : > { %860 = vpow2.f32 %v546_v36 }
 0x2b1   : > { %862 = vpow2.f32 %v550_v38  ;;  %v384_v39 = vmax.f32 %v372_v34, %v382_v33 }
 0x2b2   : > { %864 = vpow2.f32 %v554_v52 }
 0x2b3   : > { %866 = vpow2.f32 %v558_v40  ;;  %v386_v43 = vpack.c.bf16 %v384_v39, %v384_v39 }
 0x2b4   : > { %v843_v54 = vpop.eup %842  ;;  %868 = vpow2.f32 %v562_v53 }
 0x2b5   : > { %v845_v46 = vpop.eup %844  ;;  %870 = vpow2.f32 %v566_v42 }
 0x2b6   : > { %v847_v55 = vpop.eup %846  ;;  %v572_v56 = vadd.f32 %v845_v46, %v843_v54  ;;  %872 = vpow2.f32 %v570_v44  ;;  %v598_v41 = vpack.c.bf16 %v845_v46, %v843_v54 }
 0x2b7   : > { %v849_v50 = vpop.eup %848 }
 0x2b8   : > { %v851_v57 = vpop.eup %850  ;;  %v573_v58 = vadd.f32 %v847_v55, %v572_v56  ;;  %v600_v35 = vpack.c.bf16 %v849_v50, %v847_v55 }
 0x2b9   : > { %v853_v59 = vpop.eup %852 }
 0x2ba   : > { %v855_v60 = vpop.eup %854  ;;  %v574_v61 = vadd.f32 %v849_v50, %v573_v58  ;;  %v602_v30 = vpack.c.bf16 %v853_v59, %v851_v57 }
 0x2bb   : > { %v857_v62 = vpop.eup %856 }
 0x2bc   : > { %v859_v63 = vpop.eup %858  ;;  %v575_v1 = vadd.f32 %v851_v57, %v574_v61  ;;  %v604_v24 = vpack.c.bf16 %v857_v62, %v855_v60 }
 0x2bd   : > { %v861_v2 = vpop.eup %860 }
 0x2be   : > { %v863_v3 = vpop.eup %862  ;;  %v576_v7 = vadd.f32 %v853_v59, %v575_v1  ;;  %v585_v9 = vadd.f32 %v861_v2, %v859_v63  ;;  %v599_v37 = vpack.c.bf16 %v861_v2, %v859_v63 }
 0x2bf   : > { %v865_v10 = vpop.eup %864 }
 0x2c0   : > { %v867_v11 = vpop.eup %866  ;;  %v577_v12 = vadd.f32 %v855_v60, %v576_v7  ;;  %v586_v13 = vadd.f32 %v863_v3, %v585_v9  ;;  %v601_v32 = vpack.c.bf16 %v865_v10, %v863_v3  ;;  %v841_v60 = vld [vmem:[%s1028_s4] sm:$0xff]  }
 0x2c1   : > { %v869_v16 = vpop.eup %868 }
 0x2c2   : > { %v871_v17 = vpop.eup %870  ;;  %v578_v18 = vadd.f32 %v857_v62, %v577_v12  ;;  %v587_v19 = vadd.f32 %v865_v10, %v586_v13  ;;  %v603_v26 = vpack.c.bf16 %v869_v16, %v867_v11 }
 0x2c3   : > { %v873_v20 = vpop.eup %872 }
 0x2c4   : > { %v588_v21 = vadd.f32 %v867_v11, %v587_v19  ;;  %v605_v22 = vpack.c.bf16 %v873_v20, %v871_v17  ;;  %v579_v45 = vrot.slane %v578_v18, 4 }
 0x2c6   : > { %v589_v25 = vadd.f32 %v869_v16, %v588_v21  ;;  %618 = vmatprep.subr.bf16.mxu1 %v605_v22  ;;  %v580_v48 = vadd.f32 %v579_v45, %v578_v18 }
 0x2c7   : > { %619 = vmatpush1.bf16.msra.mxu1 %v604_v24 }
 0x2c8   : > { %v590_v29 = vadd.f32 %v871_v17, %v589_v25  ;;  %620 = vmatprep.subr.bf16.mxu1 %v603_v26  ;;  %v581_v15 = vrot.slane %v580_v48, 2 }
 0x2ca   : > { %v591_v31 = vadd.f32 %v873_v20, %v590_v29  ;;  %v582_v14 = vadd.f32 %v581_v15, %v580_v48 }
 0x2cb   : > { %621 = vmatpush1.bf16.msra.mxu1 %v602_v30 }
 0x2cc   : > { %622 = vmatprep.subr.bf16.mxu1 %v601_v32  ;;  %v592_v47 = vrot.slane %v591_v31, 4  ;;  %v583_v51 = vrot.slane %v582_v14, 1 }
 0x2ce   : > { %v593_v36 = vadd.f32 %v592_v47, %v591_v31  ;;  %v584_v40 = vadd.f32 %v583_v51, %v582_v14 }
 0x2cf   : > { %623 = vmatpush1.bf16.msra.mxu1 %v600_v35 }
 0x2d0   : > { %624 = vmatprep.subr.bf16.mxu1 %v599_v37  ;;  %v594_v49 = vrot.slane %v593_v36, 2  ;;  %874 = vrcp.f32 %v584_v40 }
 0x2d2   : > { %v595_v38 = vadd.f32 %v594_v49, %v593_v36 }
 0x2d3   : > { %625 = vmatpush1.bf16.msra.mxu1 %v598_v41 }
 0x2d4   : > { %v596_v52 = vrot.slane %v595_v38, 1 }
 0x2d6   : > { %808 = vmatmul.mubr.msk.bf16.vlgmr.msra.gmra.mxu1 %vm606_vm3, %v386_v43  ;;  %v597_v53 = vadd.f32 %v596_v52, %v595_v38 }
 0x2d7   : > { %705 = vmatprep.mubr.bf16.mxu1 %v886_v0 }
 0x2d8   : > { %876 = vrcp.f32 %v597_v53 }
 0x2dd   : > { %v875_v42 = vpop.eup %874 }
 0x2e5   : > { %v877_v46 = vpop.eup %876 }
 0x396   : > { %v644_v44 = vpop.f32.mrf.mxu1 }
 0x397   : > { %v653_v54 = vmul.f32 %v875_v42, %v644_v44 }
 0x398   : > { %v646_v0 = vpop.f32.mrf.mxu1 }
 0x399   : > { %v657_v55 = vpack.c.bf16 %v653_v54, %v653_v54  ;;  %v654_v56 = vmul.f32 %v877_v46, %v646_v0 }
 0x39a   : > { %v648_v50 = vpop.f32.mrf.mxu1 }
 0x39b   : > { %v658_v57 = vpack.c.bf16 %v654_v56, %v654_v56  ;;  %v668_v59 = vsel %vm418_vm1, %v657_v55, 0 }
 0x39c   : > { %v649_v58 = vpop.f32.mrf.mxu1 }
 0x39d   : > { %810 = vmatprep.subr.msk.bf16.mxu1 %vm418_vm1, %v658_v57 }
 0x39e   : > { %688 = vmatpush1.bf16.msra.mxu1 %v668_v59 }
 0x3a1   : > { %811 = vmatmul.mubr.msk.bf16.vlgmr.msra.gmra.mxu1 %vm405_vm2, %v841_v60 }
 0x461   : > { %v707_v61 = vpop.f32.mrf.mxu1 }
 0x462   : > { %v708_v62 = vadd.f32 %v707_v61, %v948_v6 }
 0x463   : > { %v709_v63 = vpop.f32.mrf.mxu1 }
 0x464   : > { %716 = vst [vmem:[%s244_s12] sm:$0xff] %v708_v62  ;;  %v710_v1 = vadd.f32 %v709_v63, %v944_v4 }
 0x465   : > { %v711_v2 = vpop.f32.mrf.mxu1 }
 0x466   : > { %717 = vst [vmem:[%s244_s12 + $0x8] sm:$0xff] %v710_v1  ;;  %v712_v3 = vadd.f32 %v711_v2, %v952_v8 }
 0x467   : > { %v713_v7 = vpop.f32.mrf.mxu1 }
 0x468   : > { %718 = vst [vmem:[%s244_s12 + $0x10] sm:$0xff] %v712_v3  ;;  %v714_v9 = vadd.f32 %v713_v7, %v946_v5 }
 0x46a   : > { %719 = vst [vmem:[%s244_s12 + $0x18] sm:$0xff] %v714_v9 }
 0x46b PF: > { %s15_s18 = sadd.s32 1, %s884_s18  }
 0x46c   : > { %p12_p4 = scmp.ge.s32.totalorder %s15_s18, 4  }
 0x46e   :  { %14 = sbr.rel (!%p12_p4) target bundleno = 1 (0x1), region = 73 }

</bundles_post_ra>
